<compile_context>
chip_gen: v5e
topology: v5e:2x2
jax: 0.10.0
libtpu: 0.0.40
codegen_flags: <defaults>
</compile_context>

<pallas_src>
import jax
import jax.numpy as jnp
from jax.experimental import pallas as pl
from jax.experimental.pallas import tpu as pltpu


def _swish_kernel(x_ref, o_ref):
    xf = x_ref[...].astype(jnp.float32)
    # sigmoid(x) = 1 / (1 + exp(-x)); both exp and the (approx) reciprocal
    # run on the EUP slot, so the VALU never becomes the binding unit.
    sig = pl.reciprocal(1.0 + jnp.exp(-xf), approx=True)
    o_ref[...] = (xf * sig).astype(o_ref.dtype)


def swish(x, *, target_block_bytes=2 * 1024 * 1024):
    """Elementwise x * sigmoid(x); same shape/dtype as input (float dtypes)."""
    orig_shape = x.shape
    orig_dtype = x.dtype
    n = x.size
    itemsize = jnp.dtype(orig_dtype).itemsize
    # Minimum sublane multiple for the block's second-to-last dim per dtype.
    sub = {2: 16, 1: 32}.get(itemsize, 8)

    # Widest lane count (multiple of 128, up to 1024) that divides n.
    lanes = None
    for cand in (1024, 512, 256, 128):
        if n % cand == 0:
            lanes = cand
            break
    if lanes is None:
        lanes = 128
        n_pad = pl.cdiv(n, lanes) * lanes  # minimal tail-only pad
    else:
        n_pad = n

    x_flat = jnp.ravel(x)
    if n_pad != n:
        # Rare path (n not a multiple of 128). swish(0) == 0, padded tail is
        # sliced off below.
        x_flat = jnp.pad(x_flat, (0, n_pad - n))

    rows = n_pad // lanes
    x2d = x_flat.reshape(rows, lanes)

    # ~2 MiB per block, rounded down to a sublane multiple. Ragged last block
    # is handled by the cdiv grid (no block-granularity host padding).
    target_rows = max(sub, target_block_bytes // (lanes * itemsize))
    target_rows = (target_rows // sub) * sub
    block_rows = rows if rows <= target_rows else target_rows
    grid = (pl.cdiv(rows, block_rows),)

    out2d = pl.pallas_call(
        _swish_kernel,
        out_shape=jax.ShapeDtypeStruct((rows, lanes), orig_dtype),
        grid_spec=pltpu.PrefetchScalarGridSpec(
            num_scalar_prefetch=0,
            grid=grid,
            in_specs=[pl.BlockSpec((block_rows, lanes), lambda i: (i, 0))],
            out_specs=pl.BlockSpec((block_rows, lanes), lambda i: (i, 0)),
        ),
        compiler_params=pltpu.CompilerParams(
            dimension_semantics=("parallel",),
        ),
        cost_estimate=pl.CostEstimate(
            flops=3 * n_pad,
            transcendentals=n_pad,
            bytes_accessed=2 * n_pad * itemsize,
        ),
    )(x2d)

    out_flat = out2d.reshape(-1)
    if n_pad != n:
        out_flat = out_flat[:n]
    return out_flat.reshape(orig_shape)


if __name__ == "__main__":
    key = jax.random.PRNGKey(0)
    # NCHW activation tensor, e.g. batch=2, channels=4, spatial=16x16
    x = jax.random.normal(key, (2, 4, 16, 16), dtype=jnp.float32)

    out = swish(x)
    jax.block_until_ready(out)

    # sanity check against plain-JAX reference (approx reciprocal -> loose tol)
    ref = x * jax.nn.sigmoid(x)
    assert out.shape == x.shape and out.dtype == x.dtype
    assert jnp.allclose(out, ref, atol=1e-2, rtol=1e-2)

    print("KERNEL_OK")
</pallas_src>

<mosaic_0001>
module attributes {stable_mosaic.version = 11 : i64} {
  func.func @_swish_kernel(%arg0: i32, %arg1: memref<2x1024xf32, #tpu.memory_space<vmem>>, %arg2: memref<2x1024xf32, #tpu.memory_space<vmem>>) attributes {dimension_semantics = [#tpu.dimension_semantics<parallel>], iteration_bounds = array<i64: 1>, scalar_prefetch = 0 : i64, scratch_operands = 0 : i64, tpu.core_type = #tpu.core_type<tc>, window_params = [{transform_indices = @transform_0, window_bounds = array<i64: 2, 1024>}, {transform_indices = @transform_1, window_bounds = array<i64: 2, 1024>}]} {
    %c0 = arith.constant 0 : index
    %c0_0 = arith.constant 0 : index
    %0 = vector.load %arg1[%c0, %c0_0] : memref<2x1024xf32, #tpu.memory_space<vmem>>, vector<2x1024xf32>
    %cst = arith.constant 0.000000e+00 : f32
    %1 = vector.broadcast %cst : f32 to vector<2x1024xf32>
    %2 = arith.subf %1, %0 : vector<2x1024xf32>
    %3 = math.exp %2 : vector<2x1024xf32>
    %cst_1 = arith.constant 1.000000e+00 : f32
    %4 = vector.broadcast %cst_1 : f32 to vector<2x1024xf32>
    %5 = arith.addf %4, %3 : vector<2x1024xf32>
    %6 = tpu.reciprocal %5 {approx = true} : vector<2x1024xf32> -> vector<2x1024xf32>
    %7 = arith.mulf %0, %6 : vector<2x1024xf32>
    %c0_2 = arith.constant 0 : index
    %c0_3 = arith.constant 0 : index
    %8 = vector.load %arg2[%c0_2, %c0_3] : memref<2x1024xf32, #tpu.memory_space<vmem>>, vector<2x1024xf32>
    tpu.vector_store %arg2[%c0_2, %c0_3], %7 {strides = array<i32>} : memref<2x1024xf32, #tpu.memory_space<vmem>>, vector<2x1024xf32>,
    return
  }
  func.func @transform_0(%arg0: i32) -> (i32, i32) {
    %c0_i32 = arith.constant 0 : i32
    %c0_i32_0 = arith.constant 0 : i32
    return %arg0, %c0_i32 : i32, i32
  }
  func.func @transform_1(%arg0: i32) -> (i32, i32) {
    %c0_i32 = arith.constant 0 : i32
    %c0_i32_0 = arith.constant 0 : i32
    return %arg0, %c0_i32 : i32, i32
  }
}

</mosaic_0001>

<bundles_post_ra>
// kernel: tpu_custom_call.1
= control target key start
LH: loop header
LB: loop body
LE: loop exit
PB: predicated region body
PF: predicated region fallthrough
CT: control target
= control target key end

     0   :  { %6 = vsyncpa [#allocation3], 0  ;;  %s136_s0 = inlined_call_operand.hbm [shape: f32[2,1024], index: 0, kind: input, shape index: {}]   ;;  %s137_s1 = inlined_call_operand.hbm [shape: f32[2,1024], index: 1, kind: output, shape index: {}]  }
   0x1   :  { %7 = vsyncpa [#allocation4], 0  ;;  %s13_s8 = sshll.u32 %s136_s0, 4  ;;  %s118_s9 = smov [#allocation2]   ;;  %s14_s8 = int_to_ptr.hbm [resolvable:$true] %s13_s8 }
   0x2   :  { %s15_s10 = sshll.u32 %s118_s9, 4  ;;  %s16_s10 = int_to_ptr.vmem [resolvable:$true] %s15_s10 }
   0x3   :  { %18 = dma.hbm_to_vmem [thread:$0]  %s14_s8, 256, %s16_s10, [#allocation3]  }
   0x4   :  { %114 = dma.done.wait [#allocation3], 256  }
   0x5   :  { %115 = vsyncadd [#allocation3], 4294967040  ;;  %v23_v0 = vld [vmem:[#allocation2] sm:$0xff]  ;;  %v24_v1 = vld [vmem:[#allocation2 + $0x8] sm:$0xff]  ;;  %s119_s0 = smov [#allocation5]   ;;  %s46_s14 = sshll.u32 %s137_s1, 4  ;;  %s47_s14 = int_to_ptr.hbm [resolvable:$true] %s46_s14 }
   0x6   :  { %v25_v2 = vsub.f32 0.0, %v23_v0  ;;  %v26_v3 = vsub.f32 0.0, %v24_v1  ;;  %s44_s11 = sshll.u32 %s119_s0, 4  ;;  %s45_s11 = int_to_ptr.vmem [resolvable:$true] %s44_s11 }
   0x8   :  { %v27_v4 = vmul.f32 1.442695, %v25_v2  ;;  %v29_v5 = vmul.f32 1.442695, %v26_v3 }
   0xa   :  { %58 = vpow2.f32 %v27_v4 }
   0xb   :  { %60 = vpow2.f32 %v29_v5 }
  0x10   :  { %v59_v6 = vpop.eup %58 }
  0x11   :  { %v61_v7 = vpop.eup %60  ;;  %v31_v8 = vadd.f32 1.0, %v59_v6 }
  0x12   :  { %v32_v9 = vadd.f32 1.0, %v61_v7 }
  0x13   :  { %62 = vrcp.f32 %v31_v8 }
  0x14   :  { %64 = vrcp.f32 %v32_v9 }
  0x19   :  { %v63_v10 = vpop.eup %62 }
  0x1a   :  { %v65_v11 = vpop.eup %64  ;;  %v35_v12 = vmul.f32 %v63_v10, %v23_v0 }
  0x1b   :  { %v36_v13 = vmul.f32 %v65_v11, %v24_v1 }
  0x1c   :  { %37 = vst [vmem:[#allocation5] sm:$0xff] %v35_v12 }
  0x1d   :  { %38 = vst [vmem:[#allocation5 + $0x8] sm:$0xff] %v36_v13 }
  0x1e   :  { %49 = dma.vmem_to_hbm [thread:$0]  %s45_s11, 256, %s47_s14, [#allocation4]  }
  0x1f   :  { %116 = dma.done.wait [#allocation4], 256  }
  0x20   :  { %117 = vsyncadd [#allocation4], 4294967040 }
  0x21   :  { %54 = vsyncpa [#allocation3], 1 }
  0x22   :  { %55 = vsyncpa [#allocation4], 1 }

</bundles_post_ra>
